<compile_context>
chip_gen: v6e
topology: v6e:2x2x1
jax: 0.10.0
libtpu: 0.0.40
codegen_flags: <defaults>
</compile_context>

<pallas_src>
import math

import jax
import jax.numpy as jnp
from jax.experimental import pallas as pl
from jax.experimental.pallas import tpu as pltpu

LANE = 128


def _range_sigmoid_kernel(params_ref, x_ref, o_ref):
    # params_ref: SMEM f32[2] = [scale, offset] with
    #   scale  = 0.5 * (max - min),   offset = scale + min
    # so   sigmoid(x) * (max - min) + min == scale * tanh(0.5 * x) + offset.
    scale = params_ref[0]
    offset = params_ref[1]
    # bf16 stays bf16 (native VPU/EUP path on v6e/v7x); everything else f32.
    cdt = jnp.bfloat16 if o_ref.dtype == jnp.bfloat16 else jnp.float32
    x = x_ref[...].astype(cdt)
    y = jnp.tanh(x * 0.5) * scale.astype(cdt) + offset.astype(cdt)
    o_ref[...] = y.astype(o_ref.dtype)


def range_sigmoid(x, vmax, vmin, *, target_block_bytes=4 << 20):
    """Elementwise sigmoid(x) * (vmax - vmin) + vmin via one Pallas pass."""
    orig_shape = x.shape
    orig_dtype = x.dtype
    n = x.size
    itemsize = jnp.dtype(orig_dtype).itemsize
    # Sublane packing multiple: 8 (4-byte), 16 (2-byte), 32 (1-byte) dtypes.
    mult = max(8, 32 // itemsize)

    # Zero-copy 2D view -- never pad / slice / concat the array itself.
    if n % LANE == 0:
        rows, cols = n // LANE, LANE
    elif x.ndim >= 2:
        rows, cols = math.prod(orig_shape[:-1]), orig_shape[-1]
    else:
        rows, cols = 1, n
        # TODO(synk): a huge 1-D input with n % 128 != 0 becomes one (1, n)
        # block; split upstream if it would not fit in VMEM.
    x2d = x.reshape(rows, cols)

    # Block sizing: <= target_block_bytes per block, multiple-of-`mult`
    # rows (or full extent), and >= 2 blocks whenever rows allows so both
    # v7x TensorCores get work.
    bytes_per_row = max(1, cols * itemsize)
    cap_rows = max(mult, (target_block_bytes // bytes_per_row) // mult * mult)
    if rows <= mult:
        block_rows = rows                                   # full extent
    else:
        half = pl.cdiv(pl.cdiv(rows, 2), mult) * mult       # split in >= 2
        block_rows = min(cap_rows, half)
    grid = (pl.cdiv(rows, block_rows),)

    # Fold the range math once (host/XLA side, not per element).
    scale = 0.5 * (jnp.asarray(vmax, jnp.float32) - jnp.asarray(vmin, jnp.float32))
    offset = scale + jnp.asarray(vmin, jnp.float32)
    params = jnp.stack([scale, offset])

    out2d = pl.pallas_call(
        _range_sigmoid_kernel,
        out_shape=jax.ShapeDtypeStruct((rows, cols), orig_dtype),
        grid_spec=pltpu.PrefetchScalarGridSpec(
            num_scalar_prefetch=0,
            grid=grid,
            in_specs=[
                pl.BlockSpec(memory_space=pltpu.MemorySpace.SMEM),  # [scale, offset]
                pl.BlockSpec((block_rows, cols), lambda i: (i, 0)),
            ],
            out_specs=pl.BlockSpec((block_rows, cols), lambda i: (i, 0)),
        ),
        compiler_params=pltpu.CompilerParams(
            dimension_semantics=("parallel",),
            vmem_limit_bytes=32 << 20,
        ),
        cost_estimate=pl.CostEstimate(
            flops=3 * n, transcendentals=n, bytes_accessed=2 * n * itemsize),
    )(params, x2d)

    return out2d.reshape(orig_shape)


if __name__ == "__main__":
    MAX, MIN = 5.0, -1.0  # RangeSigmoid(max=5.0, min=-1.0)
    fn = jax.jit(range_sigmoid)

    key = jax.random.PRNGKey(0)
    k1, k2, k3, k4 = jax.random.split(key, 4)

    # 1) NCHW f32, n % 128 == 0 -> lane-dense path, 2 parallel row-blocks.
    x = jax.random.normal(k1, (2, 4, 16, 16), dtype=jnp.float32)
    out = jax.block_until_ready(fn(x, MAX, MIN))
    ref = jax.nn.sigmoid(x) * (MAX - MIN) + MIN
    assert out.shape == x.shape and out.dtype == x.dtype
    assert jnp.allclose(out, ref, atol=1e-5, rtol=1e-5)

    # 2) n % 128 != 0 -> zero-copy (rows, last_dim) view, masked lane stores,
    #    partial boundary row-block (no pad / slice HBM passes).
    x2 = jax.random.normal(k2, (3, 5, 7, 9), dtype=jnp.float32)
    out2 = jax.block_until_ready(fn(x2, MAX, MIN))
    ref2 = jax.nn.sigmoid(x2) * (MAX - MIN) + MIN
    assert jnp.allclose(out2, ref2, atol=1e-5, rtol=1e-5)

    # 3) bf16 input -> bf16 in-kernel compute path (16-row sublane multiple).
    x3 = jax.random.normal(k3, (2, 8, 64, 64), dtype=jnp.bfloat16)
    out3 = jax.block_until_ready(fn(x3, MAX, MIN))
    ref3 = jax.nn.sigmoid(x3.astype(jnp.float32)) * (MAX - MIN) + MIN
    assert out3.dtype == jnp.bfloat16
    assert jnp.allclose(out3.astype(jnp.float32), ref3, atol=1e-1, rtol=5e-2)

    # 4) 1-D, non-128-divisible size -> (1, n) full-extent block.
    x4 = jax.random.normal(k4, (200,), dtype=jnp.float32)
    out4 = jax.block_until_ready(fn(x4, MAX, MIN))
    ref4 = jax.nn.sigmoid(x4) * (MAX - MIN) + MIN
    assert jnp.allclose(out4, ref4, atol=1e-5, rtol=1e-5)

    print("KERNEL_OK")
</pallas_src>

<mosaic_0001>
module attributes {stable_mosaic.version = 11 : i64} {
  func.func @_range_sigmoid_kernel(%arg0: i32, %arg1: memref<2xf32, #tpu.memory_space<smem>>, %arg2: memref<8x128xf32, #tpu.memory_space<vmem>>, %arg3: memref<8x128xf32, #tpu.memory_space<vmem>>) attributes {dimension_semantics = [#tpu.dimension_semantics<parallel>], iteration_bounds = array<i64: 2>, scalar_prefetch = 0 : i64, scratch_operands = 0 : i64, tpu.core_type = #tpu.core_type<tc>, window_params = [{transform_indices = @transform_0, window_bounds = array<i64: 2>}, {transform_indices = @transform_1, window_bounds = array<i64: 8, 128>}, {transform_indices = @transform_2, window_bounds = array<i64: 8, 128>}]} {
    %c0 = arith.constant 0 : index
    %0 = memref.load %arg1[%c0] : memref<2xf32, #tpu.memory_space<smem>>
    %c1 = arith.constant 1 : index
    %1 = memref.load %arg1[%c1] : memref<2xf32, #tpu.memory_space<smem>>
    %c0_0 = arith.constant 0 : index
    %c0_1 = arith.constant 0 : index
    %2 = vector.load %arg2[%c0_0, %c0_1] : memref<8x128xf32, #tpu.memory_space<vmem>>, vector<8x128xf32>
    %cst = arith.constant 5.000000e-01 : f32
    %3 = vector.broadcast %cst : f32 to vector<8x128xf32>
    %4 = arith.mulf %2, %3 : vector<8x128xf32>
    %5 = math.tanh %4 : vector<8x128xf32>
    %6 = vector.broadcast %0 : f32 to vector<8x128xf32>
    %7 = arith.mulf %5, %6 : vector<8x128xf32>
    %8 = vector.broadcast %1 : f32 to vector<8x128xf32>
    %9 = arith.addf %7, %8 : vector<8x128xf32>
    %c0_2 = arith.constant 0 : index
    %c0_3 = arith.constant 0 : index
    %10 = vector.load %arg3[%c0_2, %c0_3] : memref<8x128xf32, #tpu.memory_space<vmem>>, vector<8x128xf32>
    tpu.vector_store %arg3[%c0_2, %c0_3], %9 {strides = array<i32>} : memref<8x128xf32, #tpu.memory_space<vmem>>, vector<8x128xf32>,
    return
  }
  func.func @transform_0(%arg0: i32) -> i32 {
    %c0_i32 = arith.constant 0 : i32
    %c0_i32_0 = arith.constant 0 : i32
    return %c0_i32 : i32
  }
  func.func @transform_1(%arg0: i32) -> (i32, i32) {
    %c0_i32 = arith.constant 0 : i32
    %c0_i32_0 = arith.constant 0 : i32
    return %arg0, %c0_i32 : i32, i32
  }
  func.func @transform_2(%arg0: i32) -> (i32, i32) {
    %c0_i32 = arith.constant 0 : i32
    %c0_i32_0 = arith.constant 0 : i32
    return %arg0, %c0_i32 : i32, i32
  }
}

</mosaic_0001>

<bundles_post_ra>
// kernel: range_sigmoid.1
= control target key start
LH: loop header
LB: loop body
LE: loop exit
PB: predicated region body
PF: predicated region fallthrough
CT: control target
= control target key end

     0   :  { %7 = vsyncpa [#allocation3], 0  ;;  %s304_s9 = smov 0   ;;  %s335_s0 = inlined_call_operand.vmem [shape: f32[2], index: 0, kind: input, shape index: {}]   ;;  %s336_s1 = inlined_call_operand.vmem [shape: f32[16,128], index: 1, kind: input, shape index: {}]   ;;  %s337_s2 = inlined_call_operand.vmem [shape: f32[16,128], index: 2, kind: output, shape index: {}]  }
   0x1 LB: > { %s228_s10 = sadd.s32 4294967295, %s286_s9   ;;  %p230_p0 = scmp.ge.s32.totalorder %s286_s9, 1  ;;  %s286_s9 = sphi %s304_s9, %s13_s9  }
   0x2   : > { %p91_p1 = scmp.lt.s32.totalorder %s286_s9, 3  ;;  %s104_s13 = sshll.u32 %s335_s0, 4  ;;  %s105_s13 = int_to_ptr.vmem [resolvable:$true] %s104_s13 }
   0x3   : > { %p248_p3 = scmp.eq.s32.totalorder %s228_s10, 0  ;;  %s261_s15 = scalar_lea.vmem %s105_s13, 16 }
   0x4   : > { %p315_p2 = pnand %p230_p0, %p91_p1  ;;  %p262_p6 = scmp.ne.s32.totalorder %s105_s13, %s261_s15 }
   0x5   : > { %p269_p10 = scmp.lt.s32.totalorder %s105_s13, %s105_s13  ;;  %p270_p11 = scmp.lt.s32.totalorder %s261_s15, %s261_s15 }
   0x6   : > { %p244_p4 = pneg %p315_p2 }
   0x7   : > { %p271_p12 = por %p270_p11, %p269_p10 }
   0x8   : > { %p245_p5 = pnand %p248_p3, %p244_p4 }
   0xa   : > { %p263_p7 = pneg %p245_p5 }
   0xc   : > { %p264_p8 = pnand %p263_p7, %p262_p6 }
   0xe   : > { %p265_p9 = pneg %p264_p8 }
  0x10   : > { %p272_p13 = pnand %p271_p12, %p265_p9 }
  0x12   : > { %275 = shalt.err (!%p272_p13)
}
  0x13   : > { %s288_s16 = smov [#allocation2]   ;;  %124 = sbr.rel (%p315_p2) target bundleno = 54 (0x36), region = 28 }
  0x14   : > { %247 = dma.vmem_to_smem (!%p245_p5), %s105_s13, 16, %s288_s16, [#allocation3]  }
  0x18   : > { %281 = dma.done.wait (%p248_p3), [#allocation3], 16  }
  0x19   : > { %283 = vsyncadd (%p248_p3), [#allocation3], 4294967280 }
  0x1a   : > { %130 = sfence }
  0x1b   : > { %p145_p0 = scmp.lt.s32.totalorder %s228_s10, 1  ;;  %s153_s21 = sld [smem:[#allocation2]] }
  0x1c   : > { %s237_s22 = sld [smem:[#allocation2 + $0x1]] }
  0x1d   : > { %s340_s10 = smov (!%p145_p0, %s228_s10), 1 }
  0x1e   : > { %s235_s17 = sshll.u32 %s340_s10, 3 }
  0x1f   : > { %s148_s20 = scalar_lea.vmem %s336_s1, %s235_s17  ;;  %s152_s25 = scalar_lea.vmem %s337_s2, %s235_s17 }
  0x20   : > { %v155_v0 = vld [vmem:[%s148_s20] sm:$0xff] }
  0x21   : > { %v156_v1 = vmul.f32 0.5, %v155_v0  ;;  %v158_v2 = vstv %s153_s21 }
  0x22   : > { %v160_v4 = vstv %s237_s22 }
  0x23   : > { %259 = vtanh.f32 %v156_v1 }
  0x30   : > { %v260_v3 = vpop.eup %259 }
  0x31   : > { %v159_v5 = vmul.f32 %v260_v3, %v158_v2 }
  0x33   : > { %v161_v6 = vadd.f32 %v160_v4, %v159_v5 }
  0x35   : > { %162 = vst [vmem:[%s152_s25] sm:$0xff] %v161_v6 }
  0x36 PF: > { %s13_s9 = sadd.s32 1, %s286_s9  }
  0x37   : > { %p10_p1 = scmp.ge.s32.totalorder %s13_s9, 4  }
  0x39   :  { %12 = sbr.rel (!%p10_p1) target bundleno = 1 (0x1), region = 63 }
  0x3e   :  { %182 = vsyncpa [#allocation3], 1 }
  0x3f   :  { %184 = vsyncpa [#allocation3 + $0x1], 1 }

</bundles_post_ra>
